<compile_context>
chip_gen: v7x
topology: tpu7x:2x2x1
jax: 0.10.0
libtpu: 0.0.40
codegen_flags: <defaults>
</compile_context>

<pallas_src>
import numpy as np
import jax
import jax.numpy as jnp
from jax.experimental import pallas as pl
from jax.experimental.pallas import tpu as pltpu

_TARGET_BLOCK_BYTES = 2 * 1024 * 1024  # ~2 MiB f32 blocks: safe on v5e/v6e/v7x defaults


def _round_up(a, b):
    return -(-a // b) * b


def _kernel(params_ref, x_ref, o_ref):
    w = params_ref[0]   # conv weight (scalar, SMEM)
    b = params_ref[1]   # conv bias   (scalar, SMEM)
    c2 = params_ref[2]  # b2 = len(set(str(x))) - x.size(0)

    v1 = x_ref[...] * w + b        # Conv2d(1, 1, 1) == pointwise affine
    v2 = jnp.tanh(v1)              # Tanh (EUP slot)
    v3 = v2 * 81.0 + c2            # b1 = 3 ** 4 = 81
    # v4 = v3 / v3: exactly 1.0 for finite nonzero v3 (tanh keeps v3 finite),
    # NaN where v3 == 0.  The where-rewrite is bit-identical to the divide but
    # avoids the EUP reciprocal + Newton FMA chain (matters on v7x).
    o_ref[...] = jnp.where(v3 == 0.0, jnp.nan, 1.0).astype(jnp.float32)


@jax.jit
def _forward(x, params):
    orig_shape = x.shape
    rows = orig_shape[0]
    cols = 1
    for d in orig_shape[1:]:
        cols *= int(d)

    # Free reshape (contiguous): (N, C, H, W) -> (N, C*H*W).
    x2d = x.reshape(rows, cols).astype(jnp.float32)

    # Row blocking: ~2 MiB per block, multiple of 8 rows, and >= 2 grid steps
    # when the tensor is big enough (v7x has 2 TensorCores per chip).
    if rows <= 8:
        block_rows = rows                      # full extent, single block
    else:
        bytes_per_row = cols * 4
        cap = max(8, (_TARGET_BLOCK_BYTES // bytes_per_row) // 8 * 8)
        half = _round_up(pl.cdiv(rows, 2), 8)  # force at least 2 grid steps
        block_rows = max(8, min(cap, half))
    grid = (pl.cdiv(rows, block_rows),)        # ragged tail block is masked by Pallas

    total = rows * cols
    cost = pl.CostEstimate(
        flops=5 * total,
        transcendentals=total,
        bytes_accessed=8 * total,
    )

    out2d = pl.pallas_call(
        _kernel,
        out_shape=jax.ShapeDtypeStruct((rows, cols), jnp.float32),
        grid=grid,
        in_specs=[
            pl.BlockSpec(memory_space=pltpu.MemorySpace.SMEM),     # params (f32[3])
            pl.BlockSpec((block_rows, cols), lambda i: (i, 0)),    # x rows
        ],
        out_specs=pl.BlockSpec((block_rows, cols), lambda i: (i, 0)),
        compiler_params=pltpu.CompilerParams(
            dimension_semantics=("parallel",)),
        cost_estimate=cost,
    )(params, x2d)

    return out2d.reshape(orig_shape)


def model_tanh_forward(x, conv_w, conv_b, b2):
    """x: f32[N, 1, H, W] -> f32[N, 1, H, W]"""
    assert x.shape[1] == 1, "module is defined with a single input/output channel"
    params = jnp.asarray([conv_w, conv_b, b2], dtype=jnp.float32)
    return _forward(x, params)


if __name__ == "__main__":
    key = jax.random.PRNGKey(0)
    kx, kw, kb = jax.random.split(key, 3)

    # Small shape consistent with the module's (238, 1, 15, 26) input.
    N, C, H, W = 8, 1, 15, 26
    x = jax.random.normal(kx, (N, C, H, W), dtype=jnp.float32)

    # Deterministic Conv2d(1, 1, 1) parameters (fan_in = 1 => U(-1, 1) init);
    # scalar weight and bias.
    conv_w = float(jax.random.uniform(kw, (), minval=-1.0, maxval=1.0))
    conv_b = float(jax.random.uniform(kb, (), minval=-1.0, maxval=1.0))

    # b2 = len(set(str(x))) - x.size(0): a host-side Python scalar in the
    # original module.
    # TODO(synk): torch's tensor repr character set is not reproducible without
    # torch; numpy's repr is used as the analogous host-side scalar.
    b2 = float(len(set(str(np.asarray(x)))) - x.shape[0])

    out = model_tanh_forward(x, conv_w, conv_b, b2)
    jax.block_until_ready(out)

    # Sanity check against a pure-JAX reference (uses the literal v3 / v3).
    ref = jnp.tanh(x * conv_w + conv_b) * 81.0 + b2
    ref = ref / ref
    np.testing.assert_allclose(np.asarray(out), np.asarray(ref), rtol=1e-6, atol=1e-6)

    print("KERNEL_OK")
</pallas_src>

<mosaic_0001>
module attributes {stable_mosaic.version = 11 : i64} {
  func.func @_kernel(%arg0: i32, %arg1: memref<3xf32, #tpu.memory_space<smem>>, %arg2: memref<8x390xf32, #tpu.memory_space<vmem>>, %arg3: memref<8x390xf32, #tpu.memory_space<vmem>>) attributes {dimension_semantics = [#tpu.dimension_semantics<parallel>], iteration_bounds = array<i64: 1>, scalar_prefetch = 0 : i64, scratch_operands = 0 : i64, tpu.core_type = #tpu.core_type<tc>, window_params = [{transform_indices = @transform_0, window_bounds = array<i64: 3>}, {transform_indices = @transform_1, window_bounds = array<i64: 8, 390>}, {transform_indices = @transform_2, window_bounds = array<i64: 8, 390>}]} {
    %c0 = arith.constant 0 : index
    %0 = memref.load %arg1[%c0] : memref<3xf32, #tpu.memory_space<smem>>
    %c1 = arith.constant 1 : index
    %1 = memref.load %arg1[%c1] : memref<3xf32, #tpu.memory_space<smem>>
    %c2 = arith.constant 2 : index
    %2 = memref.load %arg1[%c2] : memref<3xf32, #tpu.memory_space<smem>>
    %c0_0 = arith.constant 0 : index
    %c0_1 = arith.constant 0 : index
    %3 = vector.load %arg2[%c0_0, %c0_1] : memref<8x390xf32, #tpu.memory_space<vmem>>, vector<8x390xf32>
    %4 = vector.broadcast %0 : f32 to vector<8x390xf32>
    %5 = arith.mulf %3, %4 : vector<8x390xf32>
    %6 = vector.broadcast %1 : f32 to vector<8x390xf32>
    %7 = arith.addf %5, %6 : vector<8x390xf32>
    %8 = math.tanh %7 : vector<8x390xf32>
    %cst = arith.constant 8.100000e+01 : f32
    %9 = vector.broadcast %cst : f32 to vector<8x390xf32>
    %10 = arith.mulf %8, %9 : vector<8x390xf32>
    %11 = vector.broadcast %2 : f32 to vector<8x390xf32>
    %12 = arith.addf %10, %11 : vector<8x390xf32>
    %cst_2 = arith.constant 0.000000e+00 : f32
    %13 = vector.broadcast %cst_2 : f32 to vector<8x390xf32>
    %14 = arith.cmpf oeq, %12, %13 : vector<8x390xf32>
    %cst_3 = arith.constant 0x7FC00000 : f32
    %cst_4 = arith.constant 1.000000e+00 : f32
    %15 = vector.broadcast %cst_3 : f32 to vector<8x390xf32>
    %16 = vector.broadcast %cst_4 : f32 to vector<8x390xf32>
    %17 = arith.select %14, %15, %16 : vector<8x390xi1>, vector<8x390xf32>
    %c0_5 = arith.constant 0 : index
    %c0_6 = arith.constant 0 : index
    %18 = vector.load %arg3[%c0_5, %c0_6] : memref<8x390xf32, #tpu.memory_space<vmem>>, vector<8x390xf32>
    tpu.vector_store %arg3[%c0_5, %c0_6], %17 {strides = array<i32>} : memref<8x390xf32, #tpu.memory_space<vmem>>, vector<8x390xf32>,
    return
  }
  func.func @transform_0(%arg0: i32) -> i32 {
    %c0_i32 = arith.constant 0 : i32
    %c0_i32_0 = arith.constant 0 : i32
    return %c0_i32 : i32
  }
  func.func @transform_1(%arg0: i32) -> (i32, i32) {
    %c0_i32 = arith.constant 0 : i32
    %c0_i32_0 = arith.constant 0 : i32
    return %arg0, %c0_i32 : i32, i32
  }
  func.func @transform_2(%arg0: i32) -> (i32, i32) {
    %c0_i32 = arith.constant 0 : i32
    %c0_i32_0 = arith.constant 0 : i32
    return %arg0, %c0_i32 : i32, i32
  }
}

</mosaic_0001>

<bundles_post_ra>
// kernel: _forward.1
= control target key start
LH: loop header
LB: loop body
LE: loop exit
PB: predicated region body
PF: predicated region fallthrough
CT: control target
= control target key end

     0   :  { %7 = vsyncpa [#allocation3], 0  ;;  %s142_s0 = inlined_call_operand.vmem [shape: f32[3], index: 0, kind: input, shape index: {}]   ;;  %s143_s1 = inlined_call_operand.vmem [shape: f32[8,390], index: 1, kind: input, shape index: {}]   ;;  %s144_s2 = inlined_call_operand.vmem [shape: f32[8,390], index: 2, kind: output, shape index: {}]  }
   0x1   :  { %s14_s11 = sshll.u32 %s142_s0, 4  ;;  %s15_s11 = int_to_ptr.vmem [resolvable:$true] %s14_s11 }
   0x2   :  { %s84_s12 = scalar_lea.vmem %s15_s11, 16  ;;  %p89_p1 = scmp.lt.s32.totalorder %s15_s11, %s15_s11 }
   0x3   :  { %p85_p0 = scmp.ne.s32.totalorder %s15_s11, %s84_s12  ;;  %p90_p2 = scmp.lt.s32.totalorder %s84_s12, %s84_s12 }
   0x5   :  { %p91_p3 = por %p90_p2, %p89_p1 }
   0x7   :  { %p92_p4 = pnand %p91_p3, %p85_p0 }
   0x9   :  { %95 = shalt.err (!%p92_p4)
}
   0xa   :  { %s98_s13 = smov [#allocation2]  }
   0xb   :  { %17 = dma.vmem_to_smem %s15_s11, 16, %s98_s13, [#allocation3]  }
   0xc   :  { %96 = dma.done.wait [#allocation3], 16  }
   0xd   :  { %97 = vsyncadd [#allocation3], 4294967280 }
   0xe   :  { %23 = sfence }
   0xf   :  { %s24_s14 = sld [smem:[#allocation2]]  ;;  %s72_s15 = sld [smem:[#allocation2 + $0x1]]  ;;  %v27_v0 = vld [vmem:[%s143_s1] sm:$0xff]  ;;  %v28_v1 = vld [vmem:[%s143_s1 + $0x8] sm:$0xff]  ;;  %v29_v2 = vld [vmem:[%s143_s1 + $0x10] sm:$0xff]  ;;  %v99_v26 = vmov 1.0  }
  0x10   :  { %v30_v3 = vld [vmem:[%s143_s1 + $0x18] sm:$0xff]  ;;  %s73_s23 = sld [smem:[#allocation2 + $0x2]]  ;;  %vm65_vm3 = vcmask 48128  }
  0x15   :  { %v31_v4 = vstv %s24_s14  ;;  %v36_v5 = vstv %s72_s15 }
  0x16   :  { %v32_v6 = vmul.f32 %v31_v4, %v27_v0  ;;  %v33_v7 = vmul.f32 %v31_v4, %v28_v1  ;;  %v34_v8 = vmul.f32 %v31_v4, %v29_v2  ;;  %v35_v9 = vmul.f32 %v31_v4, %v30_v3 }
  0x17   :  { %v49_v15 = vstv %s73_s23 }
  0x18   :  { %v37_v10 = vadd.f32 %v36_v5, %v32_v6  ;;  %v38_v11 = vadd.f32 %v36_v5, %v33_v7  ;;  %v39_v12 = vadd.f32 %v36_v5, %v34_v8  ;;  %v40_v13 = vadd.f32 %v36_v5, %v35_v9 }
  0x1a   :  { %76 = vtanh.f32 %v37_v10 }
  0x1b   :  { %78 = vtanh.f32 %v38_v11 }
  0x1c   :  { %80 = vtanh.f32 %v39_v12 }
  0x1d   :  { %82 = vtanh.f32 %v40_v13 }
  0x24   :  { %v77_v14 = vpop.eup %76 }
  0x25   :  { %v79_v16 = vpop.eup %78  ;;  %v45_v17 = vmul.f32 81.0, %v77_v14 }
  0x26   :  { %v81_v18 = vpop.eup %80  ;;  %v46_v19 = vmul.f32 81.0, %v79_v16 }
  0x27   :  { %v83_v20 = vpop.eup %82  ;;  %v50_v21 = vadd.f32 %v49_v15, %v45_v17  ;;  %v47_v22 = vmul.f32 81.0, %v81_v18 }
  0x28   :  { %v51_v23 = vadd.f32 %v49_v15, %v46_v19  ;;  %v48_v24 = vmul.f32 81.0, %v83_v20 }
  0x29   :  { %vm54_vm0 = vcmp.eq.f32.partialorder %v50_v21, 0.0  ;;  %v52_v25 = vadd.f32 %v49_v15, %v47_v22 }
  0x2a   :  { %v58_v27 = vsel %vm54_vm0, nan, %v99_v26  ;;  %vm55_vm1 = vcmp.eq.f32.partialorder %v51_v23, 0.0  ;;  %v53_v28 = vadd.f32 %v49_v15, %v48_v24 }
  0x2b   :  { %62 = vst [vmem:[%s144_s2] sm:$0xff] %v58_v27  ;;  %v59_v29 = vsel %vm55_vm1, nan, %v99_v26  ;;  %vm56_vm2 = vcmp.eq.f32.partialorder %v52_v25, 0.0 }
  0x2c   :  { %63 = vst [vmem:[%s144_s2 + $0x8] sm:$0xff] %v59_v29  ;;  %v60_v30 = vsel %vm56_vm2, nan, %v99_v26  ;;  %vm57_vm4 = vcmp.eq.f32.partialorder %v53_v28, 0.0 }
  0x2d   :  { %64 = vst [vmem:[%s144_s2 + $0x10] sm:$0xff] %v60_v30  ;;  %v61_v31 = vsel %vm57_vm4, nan, %v99_v26 }
  0x2e   :  { %66 = vst.msk [vmem:[%s144_s2 + $0x18] sm:$0xff] %vm65_vm3, %v61_v31 }
  0x2f   :  { %71 = vsyncpa [#allocation3], 1 }

</bundles_post_ra>
